<compile_context>
chip_gen: v6e
topology: v6e:2x2x1
jax: 0.10.0
libtpu: 0.0.40
codegen_flags: <defaults>
</compile_context>

<pallas_src>
import numpy as np
import jax
import jax.numpy as jnp
from jax.experimental import pallas as pl
from jax.experimental.pallas import tpu as pltpu

# Hyperparameters from LocalAttention.__init__
B = 2          # batches
S = 9          # queries (sequence length)
C = 5          # channels
W = 3          # words
WS = 4         # word_size
D = 3          # local window half-width
P = 100        # p_size

BW = B * W     # flattened word rows
BS = B * S     # flattened query rows


def _sigmoid(x):
    return 1.0 / (1.0 + jnp.exp(-x))


def local_attention_kernel(q_ref, c_ref, wa_ref, wp_ref, vp_ref, out_ref):
    q = q_ref[...]        # [BS, C]
    c = c_ref[...]        # [BW, WS]
    wa_t = wa_ref[...]    # [C, WS]
    wp_t = wp_ref[...]    # [WS, P]
    vp = vp_ref[...]      # [1, P]

    # --- predictive alignment: p_t = S * sigmoid(V_p(tanh(W_p(c_t)))) ----------
    h = jnp.tanh(jnp.dot(c, wp_t, preferred_element_type=jnp.float32))   # [BW, P]
    # V_p is a P->1 projection: lane-dense multiply + lane-axis reduction
    # (avoids a degenerate N=1 MXU matmul on a [P,1] column buffer).
    p = S * _sigmoid(jnp.sum(h * vp, axis=-1, keepdims=True))            # [BW, 1]
    p_int = p.astype(jnp.int32)   # trunc toward zero == torch .long() (p > 0)

    # --- scores over the full flattened [BW, BS] grid --------------------------
    qa = jnp.dot(q, wa_t, preferred_element_type=jnp.float32)            # [BS, WS]
    # a[r, g] = c[r, :] . qa[g, :]   (A @ B^T form)
    a = jax.lax.dot_general(c, qa, (((1,), (1,)), ((), ())),
                            preferred_element_type=jnp.float32)          # [BW, BS]

    # --- local-window + same-batch mask ----------------------------------------
    g = jax.lax.broadcasted_iota(jnp.int32, (BW, BS), 1)   # flat source column
    r = jax.lax.broadcasted_iota(jnp.int32, (BW, BS), 0)   # flat word row (b*W + w)
    # batch id of each word row, without integer division (B is a compile-time int)
    batch_of_row = jnp.zeros((BW, BS), jnp.int32)
    for b in range(1, B):
        batch_of_row = batch_of_row + (r >= b * W).astype(jnp.int32)
    j = g - batch_of_row * S                               # in-batch source position
    dist = j - p_int                                       # [BW, BS]
    valid = (j >= 0) & (j < S) & (dist >= -D) & (dist <= D)
    a = jnp.where(valid, a, -jnp.inf)                      # NaN-pad path -> -inf

    # --- masked softmax along the lane (source) axis ----------------------------
    m = jnp.max(a, axis=-1, keepdims=True)
    e = jnp.exp(a - m)
    prob = e * pl.reciprocal(jnp.sum(e, axis=-1, keepdims=True), approx=True)

    # --- gaussian locality weighting: exp(-2 * ((s - p_t) / D)^2) ---------------
    gauss = jnp.exp(-2.0 * jnp.square((j.astype(jnp.float32) - p) / D))
    prob = prob * gauss                                    # masked lanes stay exactly 0

    # --- weighted sum over the window: one matmul, one full store ---------------
    out_ref[...] = jnp.dot(prob, q, preferred_element_type=jnp.float32).astype(out_ref.dtype)


def local_attention(q, c_t, wa_t, wp_t, vp):
    q2 = q.reshape(B * S, C)
    c2 = c_t.reshape(B * W, WS)
    out = pl.pallas_call(
        local_attention_kernel,
        out_shape=jax.ShapeDtypeStruct((B * W, C), jnp.float32),
        in_specs=[pl.BlockSpec(memory_space=pltpu.MemorySpace.VMEM) for _ in range(5)],
        out_specs=pl.BlockSpec(memory_space=pltpu.MemorySpace.VMEM),
    )(q2, c2, wa_t, wp_t, vp)
    return out.reshape(B, W, C)


def local_attention_ref(q, c_t, wa_t, wp_t, vp):
    """Pure-JAX reference mirroring the PyTorch forward semantics."""
    h = jnp.tanh(c_t @ wp_t)                                    # [B, W, P]
    p = S * _sigmoid(jnp.sum(h * vp, axis=-1, keepdims=True))   # [B, W, 1]
    p_int = p.astype(jnp.int32)
    offs = jnp.arange(-D, D + 1, dtype=jnp.int32)
    s = p_int + offs[None, None, :]                             # [B, W, K]
    valid = (s >= 0) & (s < S)
    s_c = jnp.clip(s, 0, S - 1)
    q_loc = q[jnp.arange(B)[:, None, None], s_c, :]             # [B, W, K, C]
    q_loc = jnp.where(valid[..., None], q_loc, 0.0)
    wq = jnp.einsum("bwkc,cd->bwkd", q_loc, wa_t)               # [B, W, K, WS]
    a = jnp.einsum("bwkd,bwd->bwk", wq, c_t)                    # [B, W, K]
    a = jnp.where(valid, a, -jnp.inf)
    prob = jax.nn.softmax(a, axis=2)
    gauss = jnp.exp(-2.0 * jnp.square((s.astype(jnp.float32) - p) / D))
    prob = prob * gauss
    return jnp.sum(prob[..., None] * q_loc, axis=2)             # [B, W, C]


if __name__ == "__main__":
    key = jax.random.PRNGKey(0)
    kq, kc, k1, k2, k3 = jax.random.split(key, 5)

    q = jax.random.uniform(kq, (B, S, C), dtype=jnp.float32)
    c_t = jax.random.uniform(kc, (B, W, WS), dtype=jnp.float32)

    # Deterministic parameter init (PyTorch Linear default: U(-1/sqrt(fan_in), ...))
    wa = jax.random.uniform(k1, (WS, C), minval=-1.0 / np.sqrt(C), maxval=1.0 / np.sqrt(C), dtype=jnp.float32)
    wp = jax.random.uniform(k2, (P, WS), minval=-1.0 / np.sqrt(WS), maxval=1.0 / np.sqrt(WS), dtype=jnp.float32)
    vp = jax.random.uniform(k3, (1, P), minval=-1.0 / np.sqrt(P), maxval=1.0 / np.sqrt(P), dtype=jnp.float32)
    wa_t, wp_t = wa.T, wp.T

    out = jax.block_until_ready(local_attention(q, c_t, wa_t, wp_t, vp))
    ref = jax.block_until_ready(local_attention_ref(q, c_t, wa_t, wp_t, vp))

    assert out.shape == (B, W, C)
    # Slack covers the approximate EUP reciprocal used for the softmax denominator;
    # structural errors would show up as O(0.1+) deviations on these O(1) outputs.
    assert np.allclose(np.asarray(out), np.asarray(ref), rtol=1e-2, atol=1e-2), "mismatch vs reference"

    print("KERNEL_OK")
</pallas_src>

<mosaic_0001>
module attributes {stable_mosaic.version = 11 : i64} {
  func.func @local_attention_kernel(%arg0: memref<18x5xf32, #tpu.memory_space<vmem>>, %arg1: memref<6x4xf32, #tpu.memory_space<vmem>>, %arg2: memref<5x4xf32, #tpu.memory_space<vmem>>, %arg3: memref<4x100xf32, #tpu.memory_space<vmem>>, %arg4: memref<1x100xf32, #tpu.memory_space<vmem>>, %arg5: memref<6x5xf32, #tpu.memory_space<vmem>>) attributes {dimension_semantics = [], scalar_prefetch = 0 : i64, scratch_operands = 0 : i64, tpu.core_type = #tpu.core_type<tc>} {
    %c0 = arith.constant 0 : index
    %c0_0 = arith.constant 0 : index
    %0 = vector.load %arg0[%c0, %c0_0] : memref<18x5xf32, #tpu.memory_space<vmem>>, vector<18x5xf32>
    %c0_1 = arith.constant 0 : index
    %c0_2 = arith.constant 0 : index
    %1 = vector.load %arg1[%c0_1, %c0_2] : memref<6x4xf32, #tpu.memory_space<vmem>>, vector<6x4xf32>
    %c0_3 = arith.constant 0 : index
    %c0_4 = arith.constant 0 : index
    %2 = vector.load %arg2[%c0_3, %c0_4] : memref<5x4xf32, #tpu.memory_space<vmem>>, vector<5x4xf32>
    %c0_5 = arith.constant 0 : index
    %c0_6 = arith.constant 0 : index
    %3 = vector.load %arg3[%c0_5, %c0_6] : memref<4x100xf32, #tpu.memory_space<vmem>>, vector<4x100xf32>
    %c0_7 = arith.constant 0 : index
    %c0_8 = arith.constant 0 : index
    %4 = vector.load %arg4[%c0_7, %c0_8] : memref<1x100xf32, #tpu.memory_space<vmem>>, vector<1x100xf32>
    %cst = arith.constant dense<0.000000e+00> : vector<6x100xf32>
    %5 = tpu.matmul %1, %3, %cst {dimension_numbers = #tpu.dot_dimension_numbers<[1], [0], [0], [1], [0, 0, 1, 1], [], []>} : vector<6x4xf32>, vector<4x100xf32>, vector<6x100xf32> -> vector<6x100xf32>
    %6 = math.tanh %5 : vector<6x100xf32>
    %7 = vector.broadcast %4 : vector<1x100xf32> to vector<6x100xf32>
    %8 = arith.mulf %6, %7 : vector<6x100xf32>
    %cst_9 = arith.constant dense<0.000000e+00> : vector<6xf32>
    %9 = vector.multi_reduction <add>, %8, %cst_9 [1] : vector<6x100xf32> to vector<6xf32>
    %10 = vector.shape_cast %9 : vector<6xf32> to vector<6x1xf32>
    %cst_10 = arith.constant 0.000000e+00 : f32
    %11 = vector.broadcast %cst_10 : f32 to vector<6x1xf32>
    %12 = arith.subf %11, %10 : vector<6x1xf32>
    %13 = math.exp %12 : vector<6x1xf32>
    %cst_11 = arith.constant 1.000000e+00 : f32
    %14 = vector.broadcast %cst_11 : f32 to vector<6x1xf32>
    %15 = arith.addf %14, %13 : vector<6x1xf32>
    %cst_12 = arith.constant 1.000000e+00 : f32
    %16 = vector.broadcast %cst_12 : f32 to vector<6x1xf32>
    %17 = arith.divf %16, %15 : vector<6x1xf32>
    %cst_13 = arith.constant 9.000000e+00 : f32
    %18 = vector.broadcast %cst_13 : f32 to vector<6x1xf32>
    %19 = arith.mulf %18, %17 : vector<6x1xf32>
    %20 = arith.fptosi %19 : vector<6x1xf32> to vector<6x1xi32>
    %cst_14 = arith.constant dense<0.000000e+00> : vector<18x4xf32>
    %21 = tpu.matmul %0, %2, %cst_14 {dimension_numbers = #tpu.dot_dimension_numbers<[1], [0], [0], [1], [0, 0, 1, 1], [], []>} : vector<18x5xf32>, vector<5x4xf32>, vector<18x4xf32> -> vector<18x4xf32>
    %cst_15 = arith.constant dense<0.000000e+00> : vector<6x18xf32>
    %22 = tpu.matmul %1, %21, %cst_15 {dimension_numbers = #tpu.dot_dimension_numbers<[1], [1], [0], [0], [0, 0, 1, 0], [], []>} : vector<6x4xf32>, vector<18x4xf32>, vector<6x18xf32> -> vector<6x18xf32>
    %23 = tpu.iota {dimensions = array<i32: 1>} : vector<6x18xi32>
    %24 = tpu.iota {dimensions = array<i32: 0>} : vector<6x18xi32>
    %c0_i32 = arith.constant 0 : i32
    %25 = vector.broadcast %c0_i32 : i32 to vector<6x18xi32>
    %c3_i32 = arith.constant 3 : i32
    %26 = vector.broadcast %c3_i32 : i32 to vector<6x18xi32>
    %27 = arith.cmpi sge, %24, %26 : vector<6x18xi32>
    %28 = arith.extui %27 : vector<6x18xi1> to vector<6x18xi32>
    %29 = arith.addi %25, %28 : vector<6x18xi32>
    %c9_i32 = arith.constant 9 : i32
    %30 = vector.broadcast %c9_i32 : i32 to vector<6x18xi32>
    %31 = arith.muli %29, %30 : vector<6x18xi32>
    %32 = arith.subi %23, %31 : vector<6x18xi32>
    %33 = vector.broadcast %20 : vector<6x1xi32> to vector<6x18xi32>
    %34 = arith.subi %32, %33 : vector<6x18xi32>
    %c0_i32_16 = arith.constant 0 : i32
    %35 = vector.broadcast %c0_i32_16 : i32 to vector<6x18xi32>
    %36 = arith.cmpi sge, %32, %35 : vector<6x18xi32>
    %c9_i32_17 = arith.constant 9 : i32
    %37 = vector.broadcast %c9_i32_17 : i32 to vector<6x18xi32>
    %38 = arith.cmpi slt, %32, %37 : vector<6x18xi32>
    %39 = arith.andi %36, %38 : vector<6x18xi1>
    %c-3_i32 = arith.constant -3 : i32
    %40 = vector.broadcast %c-3_i32 : i32 to vector<6x18xi32>
    %41 = arith.cmpi sge, %34, %40 : vector<6x18xi32>
    %42 = arith.andi %39, %41 : vector<6x18xi1>
    %c3_i32_18 = arith.constant 3 : i32
    %43 = vector.broadcast %c3_i32_18 : i32 to vector<6x18xi32>
    %44 = arith.cmpi sle, %34, %43 : vector<6x18xi32>
    %45 = arith.andi %42, %44 : vector<6x18xi1>
    %cst_19 = arith.constant 0xFF800000 : f32
    %46 = vector.broadcast %cst_19 : f32 to vector<6x18xf32>
    %47 = arith.select %45, %22, %46 : vector<6x18xi1>, vector<6x18xf32>
    %cst_20 = arith.constant dense<0xFF800000> : vector<6xf32>
    %48 = vector.multi_reduction <maximumf>, %47, %cst_20 [1] : vector<6x18xf32> to vector<6xf32>
    %49 = vector.shape_cast %48 : vector<6xf32> to vector<6x1xf32>
    %50 = vector.broadcast %49 : vector<6x1xf32> to vector<6x18xf32>
    %51 = arith.subf %47, %50 : vector<6x18xf32>
    %52 = math.exp %51 : vector<6x18xf32>
    %cst_21 = arith.constant dense<0.000000e+00> : vector<6xf32>
    %53 = vector.multi_reduction <add>, %52, %cst_21 [1] : vector<6x18xf32> to vector<6xf32>
    %54 = vector.shape_cast %53 : vector<6xf32> to vector<6x1xf32>
    %55 = tpu.reciprocal %54 {approx = true} : vector<6x1xf32> -> vector<6x1xf32>
    %56 = vector.broadcast %55 : vector<6x1xf32> to vector<6x18xf32>
    %57 = arith.mulf %52, %56 : vector<6x18xf32>
    %58 = arith.sitofp %32 : vector<6x18xi32> to vector<6x18xf32>
    %59 = vector.broadcast %19 : vector<6x1xf32> to vector<6x18xf32>
    %60 = arith.subf %58, %59 : vector<6x18xf32>
    %cst_22 = arith.constant 3.000000e+00 : f32
    %61 = vector.broadcast %cst_22 : f32 to vector<6x18xf32>
    %62 = arith.divf %60, %61 : vector<6x18xf32>
    %63 = arith.mulf %62, %62 : vector<6x18xf32>
    %cst_23 = arith.constant -2.000000e+00 : f32
    %64 = vector.broadcast %cst_23 : f32 to vector<6x18xf32>
    %65 = arith.mulf %64, %63 : vector<6x18xf32>
    %66 = math.exp %65 : vector<6x18xf32>
    %67 = arith.mulf %57, %66 : vector<6x18xf32>
    %cst_24 = arith.constant dense<0.000000e+00> : vector<6x5xf32>
    %68 = tpu.matmul %67, %0, %cst_24 {dimension_numbers = #tpu.dot_dimension_numbers<[1], [0], [0], [1], [0, 0, 1, 1], [], []>} : vector<6x18xf32>, vector<18x5xf32>, vector<6x5xf32> -> vector<6x5xf32>
    %c0_25 = arith.constant 0 : index
    %c0_26 = arith.constant 0 : index
    %69 = vector.load %arg5[%c0_25, %c0_26] : memref<6x5xf32, #tpu.memory_space<vmem>>, vector<6x5xf32>
    tpu.vector_store %arg5[%c0_25, %c0_26], %68 {strides = array<i32>} : memref<6x5xf32, #tpu.memory_space<vmem>>, vector<6x5xf32>,
    return
  }
}

</mosaic_0001>

<bundles_post_ra>
// kernel: tpu_custom_call.1
= control target key start
LH: loop header
LB: loop body
LE: loop exit
PB: predicated region body
PF: predicated region fallthrough
CT: control target
= control target key end

     0   :  { %vm136_vm0 = vcmask 1044480   ;;  %v531_v2 = vmov 0.0   ;;  %vm532_vm1 = vmmov 0   ;;  %vm126_vm2 = vcmask 39936   ;;  %s629_s0 = inlined_call_operand.vmem [shape: f32[18,5], index: 0, kind: input, shape index: {}]   ;;  %s630_s1 = inlined_call_operand.vmem [shape: f32[6,4], index: 1, kind: input, shape index: {}]   ;;  %s631_s2 = inlined_call_operand.vmem [shape: f32[5,4], index: 2, kind: input, shape index: {}]   ;;  %s632_s3 = inlined_call_operand.vmem [shape: f32[4,100], index: 3, kind: input, shape index: {}]   ;;  %s633_s4 = inlined_call_operand.vmem [shape: f32[1,100], index: 4, kind: input, shape index: {}]   ;;  %s634_s5 = inlined_call_operand.hbm [shape: f32[6,5], index: 5, kind: output, shape index: {}]  }
   0x1   :  { %v25_v0 = vld [vmem:[%s631_s2] sm:$0x1f]  ;;  %462 = vmatprep.subr.mxu1 %v531_v2  ;;  %464 = vmatprep.mubr.msk.f32.mxu1 %vm532_vm1, %v531_v2  ;;  %vm32_vm3 = vcmask 1043456   ;;  %vm28_vm4 = vcmask 31744  }
   0x2   :  { %v571_v1 = vld [vmem:[%s629_s0] sm:$0xff]  ;;  %463 = vmatpush3.msk.msra.mxu1 %vm136_vm0, %v25_v0  ;;  %457 = vmatprep.subr.mxu0 %v531_v2 }
   0x3   :  { %v26_v3 = vld [vmem:[%s632_s3] sm:$0xf] }
   0x4   :  { %v24_v4 = vld [vmem:[%s630_s1] sm:$0x3f] }
   0x5   :  { %10 = vsyncpa [#allocation3], 0  ;;  %465 = vmatmul.mubr.msk.f32.vlgmr.msra.gmra.mxu1 %vm126_vm2, %v571_v1  ;;  %458 = vmatpush3.msk.msra.mxu0 %vm32_vm3, %v26_v3  ;;  %v590_v5 = vld [vmem:[%s629_s0 + $0x8] sm:$0xff]  ;;  %v606_v6 = vld [vmem:[%s629_s0 + $0x10] sm:$0x3]  ;;  %vm114_vm5 = vcmask 816128   ;;  %v299_v24 = vlaneseq }
   0x6   :  { %467 = vmatprep.mubr.msk.f32.mxu1 %vm532_vm1, %v531_v2  ;;  %459 = vmatprep.mubr.msk.f32.mxu0 %vm532_vm1, %v531_v2  ;;  %v432_v15 = vld [vmem:[%s633_s4] ss:$0 sm:$0xff]  ;;  %v533_v27 = vmov 0   ;;  %vm316_vm14 = vcmask 144384   ;;  %vm341_vm15 = vcmask 1041408   ;;  %vm337_vm0 = vcmask 146432  }
   0x7   :  { %460 = vmatmul.mubr.msk.f32.vlgmr.msra.gmra.mxu0 %vm28_vm4, %v24_v4  ;;  %473 = vmatprep.subr.mxu0 %v531_v2  ;;  %v302_v25 = vshrl.u32 %v299_v24, 7  ;;  %v300_v31 = vand.u32 127, %v299_v24  ;;  %s534_s4 = smov [#allocation2]  }
   0x8   :  { %479 = vmatprep.mubr.msk.f32.mxu0 %vm532_vm1, %v531_v2  ;;  %482 = vmatprep.subr.mxu1 %v531_v2  ;;  %s422_s28 = sshll.u32 %s534_s4, 4  ;;  %s423_s28 = int_to_ptr.vmem [resolvable:$true] %s422_s28 }
   0x9   :  { %468 = vmatmul.mubr.msk.f32.gmra.mxu1 %vm126_vm2, %v590_v5  ;;  %vm303_vm6 = vcmp.ge.s32.totalorder %v302_v25, 3  ;;  %s509_s29 = scalar_lea.vmem %s423_s28, 128  ;;  %p514_p1 = scmp.lt.s32.totalorder %s423_s28, %s423_s28 }
   0xa   :  { %470 = vmatprep.mubr.msk.f32.mxu1 %vm532_vm1, %v531_v2  ;;  %v304_v28 = vsel %vm303_vm6, 1, %v533_v27  ;;  %483 = vmatpush3.msk.msra.mxu1 %vm341_vm15, %v606_v6  ;;  %p510_p0 = scmp.ne.s32.totalorder %s423_s28, %s509_s29  ;;  %p515_p2 = scmp.lt.s32.totalorder %s509_s29, %s509_s29 }
   0xb   :  { %v305_v32 = vmul.u32 9, %v304_v28  ;;  %484 = vmatprep.subr.mxu1 %v531_v2 }
   0xc   :  { %485 = vmatpush3.msra.mxu1 %v590_v5  ;;  %p516_p3 = por %p515_p2, %p514_p1 }
   0xd   :  { %471 = vmatmul.mubr.msk.f32.gmra.mxu1 %vm126_vm2, %v606_v6  ;;  %v306_v34 = vsub.s32 %v300_v31, %v305_v32  ;;  %486 = vmatprep.subr.mxu1 %v531_v2 }
   0xe   :  { %488 = vmatprep.mubr.msk.f32.mxu1 %vm532_vm1, %v531_v2  ;;  %487 = vmatpush3.msra.mxu1 %v571_v1  ;;  %vm414_vm1 = vcmask 37888   ;;  %p517_p4 = pnand %p516_p3, %p510_p0 }
   0xf   :  { %vm308_vm7 = vcmp.ge.s32.totalorder %v306_v34, 0  ;;  %vm309_vm8 = vcmp.lt.s32.totalorder %v306_v34, 9  ;;  %v328_v45 = vcvt.s32.f32 %v306_v34 }
  0x10   :  { %vm310_vm9 = vmand %vm308_vm7, %vm309_vm8 }
  0xc5   :  { %v206_v7 = vpop.f32.mrf.mxu1 }
  0xc7   :  { %v466_v8 = vpop.f32.mrf.mxu1  ;;  %v102_v9 = vpop.f32.mrf.mxu0 }
  0xc8   :  { %497 = vtanh.f32 %v102_v9 }
  0xc9   :  { %v211_v10 = vpop.f32.mrf.mxu1  ;;  %v461_v11 = vpop.f32.mrf.mxu0 }
  0xcb   :  { %v469_v12 = vpop.f32.mrf.mxu1 }
  0xcd   :  { %v216_v13 = vpop.f32.mrf.mxu1 }
  0xce   :  { %474 = vmatpush3.xpose.msk.msra.mxu0 %vm28_vm4, %v216_v13 }
  0xcf   :  { %v472_v14 = vpop.f32.mrf.mxu1  ;;  %475 = vmatprep.subr.mxu0 %v531_v2 }
  0xd2   :  { %476 = vmatpush3.xpose.msk.msra.mxu0 %vm28_vm4, %v211_v10 }
  0xd3   :  { %477 = vmatprep.subr.mxu0 %v531_v2 }
  0xd5   :  { %v498_v16 = vpop.eup %497 }
  0xd6   :  { %478 = vmatpush3.xpose.msk.msra.mxu0 %vm28_vm4, %v206_v7  ;;  %v113_v17 = vmul.f32 %v498_v16, %v432_v15 }
  0xd8   :  { %v115_v18 = vsel %vm114_vm5, %v113_v17, 0.0 }
  0xd9   :  { %480 = vmatmul.mubr.msk.f32.vlgmr.msra.gmra.mxu0 %vm28_vm4, %v24_v4  ;;  %116 = vadd.xlane.f32.xlu0 %v115_v18 }
 0x162   :  { %v117_v19 = vpop.xlane.xlu0 %116 }
 0x163   :  { %v118_v20 = vsub.f32 0.0, %v117_v19 }
 0x165   :  { %v119_v21 = vmul.f32 1.442695, %v118_v20 }
 0x167   :  { %499 = vpow2.f32 %v119_v21 }
 0x174   :  { %v500_v22 = vpop.eup %499 }
 0x175   :  { %v121_v23 = vadd.f32 1.0, %v500_v22 }
 0x177   :  { %501 = vrcp.f32 %v121_v23 }
 0x184   :  { %v502_v26 = vpop.eup %501 }
 0x185   :  { %v124_v29 = vmul.f32 9.0, %v502_v26 }
 0x187   :  { %v491_v30 = vtrunc.f32 %v124_v29  ;;  %v329_v46 = vsub.f32 %v328_v45, %v124_v29 }
 0x189   :  { %v492_v33 = vcvt.f32.s32 %v491_v30  ;;  %v331_v47 = vmul.f32 0.33333334, %v329_v46 }
 0x18b   :  { %v307_v35 = vsub.s32 %v306_v34, %v492_v33  ;;  %v332_v48 = vmul.f32 %v331_v47, %v331_v47 }
 0x18d   :  { %vm311_vm10 = vcmp.ge.s32.totalorder %v307_v35, 4294967293  ;;  %vm313_vm12 = vcmp.le.s32.totalorder %v307_v35, 3  ;;  %v333_v49 = vmul.f32 -2.0, %v332_v48 }
 0x18e   :  { %vm312_vm11 = vmand %vm310_vm9, %vm311_vm10 }
 0x18f   :  { %vm314_vm13 = vmand %vm312_vm11, %vm313_vm12  ;;  %v334_v50 = vmul.f32 1.442695, %v333_v49 }
 0x199   :  { %v295_v36 = vpop.f32.mrf.mxu0 }
 0x19a   :  { %v315_v37 = vsel %vm314_vm13, %v295_v36, -inf }
 0x19b   :  { %v481_v38 = vpop.f32.mrf.mxu0  ;;  %v317_v39 = vsel %vm316_vm14, %v315_v37, -inf }
 0x19c   :  { %318 = vmax.xlane.f32.xlu0 %v317_v39 }
 0x225   :  { %v319_v40 = vpop.xlane.xlu0 %318 }
 0x226   :  { %v320_v41 = vsub.f32 %v315_v37, %v319_v40 }
 0x228   :  { %v321_v42 = vmul.f32 1.442695, %v320_v41 }
 0x22a   :  { %503 = vpow2.f32 %v321_v42 }
 0x237   :  { %v504_v43 = vpop.eup %503 }
 0x238   :  { %v323_v44 = vsel %vm316_vm14, %v504_v43, 0.0 }
 0x239   :  { %324 = vadd.xlane.f32.xlu1 %v323_v44 }
 0x2c2   :  { %v325_v51 = vpop.xlane.xlu1 %324 }
 0x2c3   :  { %505 = vrcp.f32 %v325_v51 }
 0x2c4   :  { %507 = vpow2.f32 %v334_v50 }
 0x2d0   :  { %v506_v52 = vpop.eup %505 }
 0x2d1   :  { %v327_v53 = vmul.f32 %v506_v52, %v504_v43  ;;  %v508_v54 = vpop.eup %507 }
 0x2d3   :  { %v336_v55 = vmul.f32 %v508_v54, %v327_v53 }
 0x2d5   :  { %489 = vmatmul.mubr.msk.f32.vlgmr.msra.gmra.mxu1 %vm337_vm0, %v336_v55 }
 0x395   :  { %v410_v56 = vpop.f32.mrf.mxu1 }
 0x396   :  { %415 = vst.msk [vmem:[#allocation2] sm:$0x3f] %vm414_vm1, %v410_v56 }
 0x397   :  { %v490_v57 = vpop.f32.mrf.mxu1 }
 0x398   :  { %520 = shalt.err (!%p517_p4)
}
 0x399   :  { %425 = dma.vmem_to_hbm [thread:$0]  %s423_s28, 128, %s634_s5, [#allocation3]  }
 0x39a   :  { %529 = dma.done.wait [#allocation3], 128  }
 0x39b   :  { %530 = vsyncadd [#allocation3], 4294967168 }
 0x39c   :  { %429 = vsyncpa [#allocation3], 1 }

</bundles_post_ra>
